<compile_context>
chip_gen: v6e
topology: v6e:2x2x1
jax: 0.10.0
libtpu: 0.0.40
codegen_flags: <defaults>
</compile_context>

<pallas_src>
import functools

import jax
import jax.numpy as jnp
from jax import lax
from jax.experimental import pallas as pl
from jax.experimental.pallas import tpu as pltpu

_MiB = 1024 * 1024


def _round_up(x: int, m: int) -> int:
    return ((x + m - 1) // m) * m


def _cdiv(a: int, b: int) -> int:
    return -(-a // b)


def _choose_tile(dim: int, max_tile: int, align: int):
    """Tile that is a multiple of `align`, <= ~max_tile, with minimal padding
    of `dim` (balanced blocks instead of one ragged tail)."""
    max_tile = max(align, (max_tile // align) * align)
    dim_a = _round_up(dim, align)
    if dim_a <= max_tile:
        return dim_a, dim_a
    n_blocks = _cdiv(dim_a, max_tile)
    tile = _round_up(_cdiv(dim_a, n_blocks), align)
    padded = tile * _cdiv(dim_a, tile)
    return tile, padded


def _vmem_budget_bytes() -> int:
    """~3/4 of physical VMEM per core (≈48 MiB on v7x, ≈96 MiB on v5e/v6e)."""
    try:
        cap = int(pltpu.get_tpu_info().vmem_capacity_bytes)
    except Exception:
        cap = 64 * _MiB  # conservative (v7x-sized) fallback
    return (cap * 3) // 4


def _dot_nt(x, w):
    # x: (tm, tk); w: (tn, tk) in PyTorch (out, in) layout.  Contract K (the lane
    # axis of both operands) -- same pattern as q @ k^T in flash attention; the
    # MXU consumes the transposed RHS natively.  f32 accumulation.
    return lax.dot_general(
        x, w,
        dimension_numbers=(((1,), (1,)), ((), ())),
        preferred_element_type=jnp.float32,
    )


def _bias_gelu(acc_f32, b_row, out_dtype):
    # exact GELU: 0.5 * z * (1 + erf(z / sqrt(2)))   (all in f32)
    z = acc_f32 + b_row.astype(jnp.float32)
    inv_sqrt2 = jnp.float32(0.7071067811865476)
    return (0.5 * z * (1.0 + lax.erf(z * inv_sqrt2))).astype(out_dtype)


def _accumulate_and_finalize(contrib, b_ref, o_ref, acc_ref):
    k = pl.program_id(2)

    @pl.when(k == 0)
    def _():
        acc_ref[...] = contrib          # no zero-init + add on the first step

    @pl.when(k != 0)
    def _():
        acc_ref[...] += contrib

    @pl.when(k == pl.num_programs(2) - 1)
    def _():
        o_ref[...] = _bias_gelu(acc_ref[...], b_ref[...], o_ref.dtype)


def _flg_kernel_single_k(x_ref, w_ref, b_ref, o_ref):
    """Whole K fits one tile: dot -> bias -> GELU straight to the output tile."""
    o_ref[...] = _bias_gelu(_dot_nt(x_ref[...], w_ref[...]), b_ref[...], o_ref.dtype)


def _flg_kernel_streamed(x_ref, w_ref, b_ref, o_ref, acc_ref):
    """x streamed as (tm, tk) tiles (fallback when the full-K panel is too big)."""
    contrib = _dot_nt(x_ref[...], w_ref[...])
    _accumulate_and_finalize(contrib, b_ref, o_ref, acc_ref)


def _flg_kernel_resident(x_ref, w_ref, b_ref, o_ref, acc_ref, *, tk):
    """x is a VMEM-resident (tm, Kp) panel (DMA'd once per i-row); slice the
    current K chunk in-kernel."""
    k = pl.program_id(2)
    start = pl.multiple_of(k * tk, tk)          # tk is a multiple of 128
    contrib = _dot_nt(x_ref[:, pl.ds(start, tk)], w_ref[...])
    _accumulate_and_finalize(contrib, b_ref, o_ref, acc_ref)


@functools.partial(jax.jit, static_argnames=("tm", "tn", "tk", "compute_dtype"))
def fused_linear_gelu(x, weight, bias=None, *, tm=512, tn=1024, tk=1024,
                      compute_dtype=jnp.bfloat16):
    """y = GELU(x @ weight.T + bias), matching PyTorch FusedLinearGELU.forward.

    x:       (..., in_features)
    weight:  (out_features, in_features)   -- PyTorch convention, NOT transposed
    bias:    (out_features,) or None
    compute_dtype: matmul-operand dtype (default bf16; accumulation, bias and
                   GELU stay in f32).  Pass jnp.float32 for bit-faithful f32.
    """
    out_features, in_features = weight.shape
    lead_shape = x.shape[:-1]
    out_dtype = x.dtype

    x2d = x.reshape(-1, in_features)              # (M, K)
    M, K = x2d.shape
    N = out_features

    if bias is None:
        bias = jnp.zeros((N,), dtype=jnp.float32)

    if compute_dtype is not None:
        x2d = x2d.astype(compute_dtype)
        weight = weight.astype(compute_dtype)

    in_item = jnp.dtype(x2d.dtype).itemsize
    w_item = jnp.dtype(weight.dtype).itemsize
    out_item = jnp.dtype(out_dtype).itemsize

    min_item = min(in_item, out_item)
    sublane = 32 if min_item == 1 else (16 if min_item == 2 else 8)

    # --- tile sizing (balanced blocks, minimal padding) ----------------------
    tm_eff, Mp = _choose_tile(M, tm, sublane)
    tn_eff, Np = _choose_tile(N, tn, 128)
    tk_eff, Kp = _choose_tile(K, tk, 128)

    # v7x megacore: ensure >=2 output blocks along the parallel axes when possible.
    if (Mp // tm_eff) * (Np // tn_eff) < 2:
        if N > 128:
            tn_eff, Np = _choose_tile(N, max(128, _round_up((N + 1) // 2, 128)), 128)
        elif M > sublane:
            tm_eff, Mp = _choose_tile(M, max(sublane, _round_up((M + 1) // 2, sublane)),
                                      sublane)

    nk = Kp // tk_eff

    # --- zero-pad to tile multiples (no-op for the common 128-multiple case) --
    if Mp != M or Kp != K:
        x2d = jnp.pad(x2d, ((0, Mp - M), (0, Kp - K)))
    if Np != N or Kp != K:
        weight = jnp.pad(weight, ((0, Np - N), (0, Kp - K)))
    b2d = bias.astype(jnp.float32).reshape(1, N)
    if Np != N:
        b2d = jnp.pad(b2d, ((0, 0), (0, Np - N)))

    # --- VMEM budget (generation-aware) & resident-panel decision -------------
    vmem_cap = _vmem_budget_bytes()
    w_tile_b = 2 * tn_eff * tk_eff * w_item          # weight tile, double-buffered
    out_tile_b = 2 * tm_eff * tn_eff * out_item      # output tile, double-buffered
    acc_b = tm_eff * tn_eff * 4 if nk > 1 else 0     # f32 accumulator scratch
    bias_b = 2 * Np * 4
    resident_ws = 2 * tm_eff * Kp * in_item + w_tile_b + out_tile_b + acc_b + bias_b
    streamed_ws = 2 * tm_eff * tk_eff * in_item + w_tile_b + out_tile_b + acc_b + bias_b

    use_resident = (nk > 1) and (resident_ws + 4 * _MiB <= vmem_cap)
    working_set = resident_ws if use_resident else streamed_ws
    vmem_limit = int(min(vmem_cap, max(32 * _MiB, working_set + 4 * _MiB)))

    if nk == 1:
        kernel = _flg_kernel_single_k
        x_spec = pl.BlockSpec((tm_eff, tk_eff), lambda i, j, k: (i, k))
        scratch = []
    elif use_resident:
        kernel = functools.partial(_flg_kernel_resident, tk=tk_eff)
        # Full-K panel, constant across j and k -> DMA'd once per i-row.
        x_spec = pl.BlockSpec((tm_eff, Kp), lambda i, j, k: (i, 0))
        scratch = [pltpu.VMEM((tm_eff, tn_eff), jnp.float32)]
    else:
        kernel = _flg_kernel_streamed
        x_spec = pl.BlockSpec((tm_eff, tk_eff), lambda i, j, k: (i, k))
        scratch = [pltpu.VMEM((tm_eff, tn_eff), jnp.float32)]

    gi, gj = Mp // tm_eff, Np // tn_eff
    grid = (gi, gj, nk)

    x_reads = 1 if use_resident else gj
    cost = pl.CostEstimate(
        flops=2 * M * N * K,
        transcendentals=M * N,
        bytes_accessed=int(x_reads * Mp * Kp * in_item + gi * Np * Kp * w_item
                           + Mp * Np * out_item + Np * 4),
    )

    out = pl.pallas_call(
        kernel,
        out_shape=jax.ShapeDtypeStruct((Mp, Np), out_dtype),
        grid_spec=pltpu.PrefetchScalarGridSpec(
            num_scalar_prefetch=0,
            grid=grid,
            in_specs=[
                x_spec,                                                   # x
                pl.BlockSpec((tn_eff, tk_eff), lambda i, j, k: (j, k)),   # w (N, K)
                pl.BlockSpec((1, tn_eff), lambda i, j, k: (0, j)),        # bias
            ],
            out_specs=pl.BlockSpec((tm_eff, tn_eff), lambda i, j, k: (i, j)),
            scratch_shapes=scratch,
        ),
        compiler_params=pltpu.CompilerParams(
            dimension_semantics=("parallel", "parallel", "arbitrary"),
            vmem_limit_bytes=vmem_limit,
        ),
        cost_estimate=cost,
    )(x2d, weight, b2d)

    out = out[:M, :N]
    return out.reshape(*lead_shape, N)


if __name__ == "__main__":
    key = jax.random.PRNGKey(0)
    ks = jax.random.split(key, 9)

    def _gelu_ref(z):
        return 0.5 * z * (1.0 + lax.erf(z * jnp.float32(0.7071067811865476)))

    def _ref(x, w, b, cast=None):
        if cast is not None:
            x = x.astype(cast).astype(jnp.float32)
            w = w.astype(cast).astype(jnp.float32)
        return _gelu_ref(x @ w.T + b)

    # Case 1: module-scale shapes (batch=2, seq=8, in=128, out=128); default path
    # (bf16 matmul operands, f32 accumulation + f32 bias/GELU epilogue).
    x1 = jax.random.normal(ks[0], (2, 8, 128), jnp.float32)
    w1 = jax.random.normal(ks[1], (128, 128), jnp.float32) / jnp.sqrt(128.0)
    b1 = jax.random.normal(ks[2], (128,), jnp.float32) * 0.01
    y1 = jax.block_until_ready(fused_linear_gelu(x1, w1, b1))
    assert y1.shape == (2, 8, 128)
    assert jnp.allclose(y1, _ref(x1, w1, b1, cast=jnp.bfloat16), atol=2e-3, rtol=2e-3), \
        "case 1 mismatch vs bf16-operand reference"
    assert jnp.allclose(y1, _ref(x1, w1, b1), atol=5e-2, rtol=5e-2), \
        "case 1 mismatch vs f32 reference"

    # Case 2: non-tile-divisible shapes + exact f32 operands (bit-faithful to the
    # f32 PyTorch module); exercises the padding / slicing path.
    x2 = jax.random.normal(ks[3], (3, 5, 100), jnp.float32)
    w2 = jax.random.normal(ks[4], (96, 100), jnp.float32) / jnp.sqrt(100.0)
    b2 = jax.random.normal(ks[5], (96,), jnp.float32) * 0.01
    y2 = jax.block_until_ready(
        fused_linear_gelu(x2, w2, b2, compute_dtype=jnp.float32))
    assert y2.shape == (3, 5, 96)
    assert jnp.allclose(y2, _ref(x2, w2, b2), atol=1e-4, rtol=1e-4), "case 2 mismatch"

    # Case 3: K spanning several tiles -> exercises the multi-step K accumulation
    # with the VMEM-resident x panel (default bf16 path).
    x3 = jax.random.normal(ks[6], (2, 64, 2304), jnp.float32)
    w3 = jax.random.normal(ks[7], (256, 2304), jnp.float32) / jnp.sqrt(2304.0)
    b3 = jax.random.normal(ks[8], (256,), jnp.float32) * 0.01
    y3 = jax.block_until_ready(fused_linear_gelu(x3, w3, b3))
    assert y3.shape == (2, 64, 256)
    assert jnp.allclose(y3, _ref(x3, w3, b3, cast=jnp.bfloat16), atol=5e-3, rtol=5e-3), \
        "case 3 mismatch"

    print("KERNEL_OK")
</pallas_src>

<mosaic_0001>
module attributes {stable_mosaic.version = 11 : i64} {
  func.func @_flg_kernel_single_k(%arg0: i32, %arg1: i32, %arg2: i32, %arg3: memref<16x128xbf16, #tpu.memory_space<vmem>>, %arg4: memref<128x128xbf16, #tpu.memory_space<vmem>>, %arg5: memref<1x128xf32, #tpu.memory_space<vmem>>, %arg6: memref<16x128xf32, #tpu.memory_space<vmem>>) attributes {dimension_semantics = [#tpu.dimension_semantics<parallel>, #tpu.dimension_semantics<parallel>, #tpu.dimension_semantics<arbitrary>], iteration_bounds = array<i64: 1, 1, 1>, scalar_prefetch = 0 : i64, scratch_operands = 0 : i64, tpu.core_type = #tpu.core_type<tc>, window_params = [{transform_indices = @transform_0, window_bounds = array<i64: 16, 128>}, {transform_indices = @transform_1, window_bounds = array<i64: 128, 128>}, {transform_indices = @transform_2, window_bounds = array<i64: 1, 128>}, {transform_indices = @transform_3, window_bounds = array<i64: 16, 128>}]} {
    %c0 = arith.constant 0 : index
    %c0_0 = arith.constant 0 : index
    %0 = vector.load %arg3[%c0, %c0_0] : memref<16x128xbf16, #tpu.memory_space<vmem>>, vector<16x128xbf16>
    %c0_1 = arith.constant 0 : index
    %c0_2 = arith.constant 0 : index
    %1 = vector.load %arg4[%c0_1, %c0_2] : memref<128x128xbf16, #tpu.memory_space<vmem>>, vector<128x128xbf16>
    %cst = arith.constant dense<0.000000e+00> : vector<16x128xf32>
    %2 = tpu.matmul %0, %1, %cst {dimension_numbers = #tpu.dot_dimension_numbers<[1], [1], [0], [0], [0, 0, 1, 0], [], []>} : vector<16x128xbf16>, vector<128x128xbf16>, vector<16x128xf32> -> vector<16x128xf32>
    %c0_3 = arith.constant 0 : index
    %c0_4 = arith.constant 0 : index
    %3 = vector.load %arg5[%c0_3, %c0_4] : memref<1x128xf32, #tpu.memory_space<vmem>>, vector<1x128xf32>
    %4 = vector.broadcast %3 : vector<1x128xf32> to vector<16x128xf32>
    %5 = arith.addf %2, %4 : vector<16x128xf32>
    %cst_5 = arith.constant 5.000000e-01 : f32
    %6 = vector.broadcast %cst_5 : f32 to vector<16x128xf32>
    %7 = arith.mulf %6, %5 : vector<16x128xf32>
    %cst_6 = arith.constant 0.707106769 : f32
    %8 = vector.broadcast %cst_6 : f32 to vector<16x128xf32>
    %9 = arith.mulf %5, %8 : vector<16x128xf32>
    %10 = math.erf %9 : vector<16x128xf32>
    %cst_7 = arith.constant 1.000000e+00 : f32
    %11 = vector.broadcast %cst_7 : f32 to vector<16x128xf32>
    %12 = arith.addf %11, %10 : vector<16x128xf32>
    %13 = arith.mulf %7, %12 : vector<16x128xf32>
    %c0_8 = arith.constant 0 : index
    %c0_9 = arith.constant 0 : index
    %14 = vector.load %arg6[%c0_8, %c0_9] : memref<16x128xf32, #tpu.memory_space<vmem>>, vector<16x128xf32>
    tpu.vector_store %arg6[%c0_8, %c0_9], %13 {strides = array<i32>} : memref<16x128xf32, #tpu.memory_space<vmem>>, vector<16x128xf32>,
    return
  }
  func.func @transform_0(%arg0: i32, %arg1: i32, %arg2: i32) -> (i32, i32) {
    %c0_i32 = arith.constant 0 : i32
    return %arg0, %arg2 : i32, i32
  }
  func.func @transform_1(%arg0: i32, %arg1: i32, %arg2: i32) -> (i32, i32) {
    %c0_i32 = arith.constant 0 : i32
    return %arg1, %arg2 : i32, i32
  }
  func.func @transform_2(%arg0: i32, %arg1: i32, %arg2: i32) -> (i32, i32) {
    %c0_i32 = arith.constant 0 : i32
    %c0_i32_0 = arith.constant 0 : i32
    return %c0_i32, %arg1 : i32, i32
  }
  func.func @transform_3(%arg0: i32, %arg1: i32, %arg2: i32) -> (i32, i32) {
    %c0_i32 = arith.constant 0 : i32
    return %arg0, %arg1 : i32, i32
  }
}

</mosaic_0001>

<bundles_post_ra>
// kernel: fused_linear_gelu.1
= control target key start
LH: loop header
LB: loop body
LE: loop exit
PB: predicated region body
PF: predicated region fallthrough
CT: control target
= control target key end

     0   :  { %v243_v1 = vmov 0.0   ;;  %vm244_vm0 = vmmov 0   ;;  %s301_s0 = inlined_call_operand.vmem [shape: bf16[16,128], index: 0, kind: input, shape index: {}]   ;;  %s302_s1 = inlined_call_operand.vmem [shape: bf16[128,128], index: 1, kind: input, shape index: {}]   ;;  %s303_s2 = inlined_call_operand.vmem [shape: f32[1,128], index: 2, kind: input, shape index: {}]   ;;  %s304_s3 = inlined_call_operand.hbm [shape: f32[16,128], index: 3, kind: output, shape index: {}]  }
   0x1   :  { %v208_v0 = vld [vmem:[%s302_s1 + $0x38] sm:$0xff]   ;;  %183 = vmatprep.subr.bf16.mxu0 %v243_v1  ;;  %199 = vmatprep.mubr.msk.bf16.mxu0 %vm244_vm0, %v243_v1  ;;  %v209_v2 = vld [vmem:[%s302_s1 + $0x30] sm:$0xff]  }
   0x2   :  { %184 = vmatpush3.bf16.xpose.msra.mxu0 %v208_v0 }
   0x3   :  { %185 = vmatprep.subr.bf16.mxu0 %v243_v1 }
   0x4   :  { %8 = vsyncpa [#allocation3], 0  ;;  %v210_v3 = vld [vmem:[%s302_s1 + $0x28] sm:$0xff]   ;;  %v211_v4 = vld [vmem:[%s302_s1 + $0x20] sm:$0xff]  }
   0x5   :  { %v212_v5 = vld [vmem:[%s302_s1 + $0x18] sm:$0xff]   ;;  %v213_v6 = vld [vmem:[%s302_s1 + $0x10] sm:$0xff]   ;;  %v214_v7 = vld [vmem:[%s302_s1 + $0x8] sm:$0xff]  }
   0x6   :  { %v215_v8 = vld [vmem:[%s302_s1] sm:$0xff]  }
   0x7   :  { %v216_v9 = vld [vmem:[%s301_s0] sm:$0xff]   ;;  %s245_s0 = smov [#allocation2]  }
   0x8   :  { %v164_v10 = vld [vmem:[%s303_s2] ss:$0 sm:$0xff]  ;;  %s153_s1 = sshll.u32 %s245_s0, 4  ;;  %s154_s1 = int_to_ptr.vmem [resolvable:$true] %s153_s1 }
   0x9   :  { %s221_s2 = scalar_lea.vmem %s154_s1, 256  ;;  %p226_p1 = scmp.lt.s32.totalorder %s154_s1, %s154_s1 }
   0xa   :  { %186 = vmatpush3.bf16.xpose.msra.mxu0 %v209_v2  ;;  %p222_p0 = scmp.ne.s32.totalorder %s154_s1, %s221_s2  ;;  %p227_p2 = scmp.lt.s32.totalorder %s221_s2, %s221_s2 }
   0xb   :  { %187 = vmatprep.subr.bf16.mxu0 %v243_v1 }
   0xc   :  { %p228_p3 = por %p227_p2, %p226_p1 }
   0xe   :  { %p229_p4 = pnand %p228_p3, %p222_p0 }
  0x12   :  { %188 = vmatpush3.bf16.xpose.msra.mxu0 %v210_v3 }
  0x13   :  { %189 = vmatprep.subr.bf16.mxu0 %v243_v1 }
  0x1a   :  { %190 = vmatpush3.bf16.xpose.msra.mxu0 %v211_v4 }
  0x1b   :  { %191 = vmatprep.subr.bf16.mxu0 %v243_v1 }
  0x22   :  { %192 = vmatpush3.bf16.xpose.msra.mxu0 %v212_v5 }
  0x23   :  { %193 = vmatprep.subr.bf16.mxu0 %v243_v1 }
  0x2a   :  { %194 = vmatpush3.bf16.xpose.msra.mxu0 %v213_v6 }
  0x2b   :  { %195 = vmatprep.subr.bf16.mxu0 %v243_v1 }
  0x32   :  { %196 = vmatpush3.bf16.xpose.msra.mxu0 %v214_v7 }
  0x33   :  { %197 = vmatprep.subr.bf16.mxu0 %v243_v1 }
  0x3a   :  { %198 = vmatpush3.bf16.xpose.msra.mxu0 %v215_v8 }
  0x41   :  { %200 = vmatmul.mubr.bf16.vlgmr.msra.gmra.mxu0 %v216_v9 }
 0x101   :  { %v129_v11 = vpop.f32.mrf.mxu0 }
 0x102   :  { %v130_v12 = vadd.f32 %v164_v10, %v129_v11 }
 0x103   :  { %v201_v13 = vpop.f32.mrf.mxu0 }
 0x104   :  { %v138_v14 = vmul.f32 0.70710677, %v130_v12  ;;  %v136_v20 = vmul.f32 0.5, %v130_v12 }
 0x105   :  { %v132_v15 = vpop.f32.mrf.mxu0 }
 0x106   :  { %217 = verf.f32 %v138_v14  ;;  %v133_v16 = vadd.f32 %v164_v10, %v132_v15 }
 0x107   :  { %v202_v17 = vpop.f32.mrf.mxu0 }
 0x108   :  { %v139_v18 = vmul.f32 0.70710677, %v133_v16  ;;  %v137_v24 = vmul.f32 0.5, %v133_v16 }
 0x10a   :  { %219 = verf.f32 %v139_v18 }
 0x113   :  { %v218_v19 = vpop.eup %217 }
 0x114   :  { %v142_v21 = vadd.f32 1.0, %v218_v19 }
 0x116   :  { %v144_v22 = vmul.f32 %v142_v21, %v136_v20 }
 0x117   :  { %v220_v23 = vpop.eup %219 }
 0x118   :  { %146 = vst [vmem:[#allocation2] sm:$0xff] %v144_v22  ;;  %v143_v25 = vadd.f32 1.0, %v220_v23 }
 0x11a   :  { %v145_v26 = vmul.f32 %v143_v25, %v137_v24 }
 0x11c   :  { %147 = vst [vmem:[#allocation2 + $0x8] sm:$0xff] %v145_v26 }
 0x11d   :  { %232 = shalt.err (!%p229_p4)
}
 0x11e   :  { %s246_s5 = smov 128   ;;  %s247_s6 = smov 8  }
 0x11f   :  { %159 = dma.vmem_to_hbm [thread:$0]  %s154_s1, 256, %s304_s3, [#allocation3], %s246_s5, %s246_s5, %s247_s6  }
 0x120   :  { %241 = dma.done.wait [#allocation3], 256  }
 0x121   :  { %242 = vsyncadd [#allocation3], 4294967040 }
 0x122   :  { %163 = vsyncpa [#allocation3], 1 }

</bundles_post_ra>
